<compile_context>
chip_gen: v5e
topology: v5e:2x2
jax: 0.10.0
libtpu: 0.0.40
codegen_flags: <defaults>
</compile_context>

<pallas_src>
import math

import jax
import jax.numpy as jnp
from jax.experimental import pallas as pl
from jax.experimental.pallas import tpu as pltpu


def _round_up(n, m):
    return ((n + m - 1) // m) * m


def _vmem_budget_bytes():
    """Per-core VMEM budget with headroom for Mosaic internal scratch."""
    try:
        cap = int(pltpu.get_tpu_info().vmem_capacity_bytes)
    except Exception:
        cap = 64 * 2**20          # conservative default: v7x per-TensorCore VMEM
    return max(16 * 2**20, int(0.8 * cap))   # ~51 MiB on v7x, ~102 MiB on v5e/v6e


def _make_cheb_kernel(K, matmul_dtype):
    def kernel(w_ref, lap_ref, x_ref, o_ref):
        # w_ref:  SMEM (K,) f32 Chebyshev coefficients
        # lap_ref: VMEM (Npx_p, Npx_p) resident L^T in matmul_dtype (single-buffered)
        # x_ref / o_ref: VMEM (tm, Npx_p) row tiles
        lap = lap_ref[...]
        x = x_ref[...]
        acc = w_ref[0] * x.astype(jnp.float32)               # w_0 * Y_0
        if K >= 2:
            y0 = x.astype(matmul_dtype)                      # Y_0, state in matmul dtype
            # Y_1 = Y_0 @ L^T : plain dot against L^T's first axis (no relayout).
            y1f = jnp.dot(y0, lap, preferred_element_type=jnp.float32)
            acc = acc + w_ref[1] * y1f
            y1 = y1f.astype(matmul_dtype)
            for k in range(2, K):                            # static unroll over Cheb order
                y2f = 2.0 * jnp.dot(y1, lap, preferred_element_type=jnp.float32) \
                      - y0.astype(jnp.float32)
                acc = acc + w_ref[k] * y2f
                y0, y1 = y1, y2f.astype(matmul_dtype)
        o_ref[...] = acc.astype(o_ref.dtype)

    return kernel


def spherical_cheb_conv(laplacian, x, weight, *, tm_max=512, matmul_dtype=jnp.bfloat16):
    """Pallas implementation of SphericalChebConv.forward (bias=False path).

    Args:
      laplacian: (Npx, Npx) dense Laplacian.
      x:         (..., Npx) input; leading dims (batch/channels/samples) are folded
                 into the row dimension.
      weight:    (K,) Chebyshev filter coefficients.
      tm_max:    upper bound for the row tile over the (folded) sample dimension.
      matmul_dtype: jnp.bfloat16 (default, native MXU path, f32 accumulation) or
                 jnp.float32 for exact-semantics matmuls.
    Returns:
      Output with the same shape as `x`.
    """
    orig_shape = x.shape
    x2 = x[None, :] if x.ndim == 1 else x.reshape(-1, x.shape[-1])
    Nsamps, Npx = x2.shape
    K = int(weight.shape[0])

    xsize = jnp.dtype(x2.dtype).itemsize
    msize = jnp.dtype(matmul_dtype).itemsize
    row_align = 16 if xsize == 2 else 8          # bf16 inputs need 16-row sublane tiles

    # --- tiling / VMEM plan --------------------------------------------------
    Npx_p = _round_up(Npx, 128)                  # lane-dense stores, full MXU tiles
    lap_bytes = Npx_p * Npx_p * msize

    def tile_bytes(tm_):
        io = 2 * 2 * tm_ * Npx_p * xsize         # x + out row tiles, double-buffered
        state = 2 * tm_ * Npx_p * msize          # y0, y1 recurrence state
        f32tmp = 3 * tm_ * Npx_p * 4             # f32 acc + matmul result + cast slack
        return io + state + f32tmp

    budget = _vmem_budget_bytes()

    # Row tile: as big as tm_max allows but sized to minimize dead row padding.
    tm_max = max(int(tm_max), row_align)
    n_tiles = -(-Nsamps // tm_max)
    tm = _round_up(-(-Nsamps // n_tiles), row_align)
    while tm > row_align and lap_bytes + tile_bytes(tm) > budget:
        tm = _round_up(max(row_align, tm // 2), row_align)
    # TODO(synk): if lap_bytes alone exceeds `budget` (very large HEALPix grids), a
    # streamed-Laplacian path is required instead of the resident-L BlockSpec below.
    n_tiles = -(-Nsamps // tm)
    Nsamps_p = n_tiles * tm

    # --- padding / host-side prep --------------------------------------------
    lap_t = laplacian.T                          # one-time host transpose: kernel sees L^T
    if Npx_p != Npx:
        # Zero rows/cols keep the Chebyshev recurrence exact on the real vertices.
        lap_t = jnp.pad(lap_t, ((0, Npx_p - Npx), (0, Npx_p - Npx)))
    lap_t = lap_t.astype(matmul_dtype)
    if (Nsamps_p, Npx_p) != (Nsamps, Npx):
        x2 = jnp.pad(x2, ((0, Nsamps_p - Nsamps), (0, Npx_p - Npx)))
    w = weight.astype(jnp.float32)

    cost = pl.CostEstimate(
        flops=2 * (K - 1) * Nsamps_p * Npx_p * Npx_p + 3 * K * Nsamps_p * Npx_p,
        transcendentals=0,
        bytes_accessed=lap_bytes + 2 * Nsamps_p * Npx_p * xsize + 4 * K)

    kernel = _make_cheb_kernel(K, matmul_dtype)
    grid = (Nsamps_p // tm,)

    def build(lap_buffers):
        lap_kwargs = {"pipeline_mode": pl.Buffered(1)} if lap_buffers == 1 else {}
        needed = lap_buffers * lap_bytes + tile_bytes(tm)
        vmem_limit = int(min(budget, max(16 * 2**20, int(1.2 * needed))))
        return pl.pallas_call(
            kernel,
            out_shape=jax.ShapeDtypeStruct((Nsamps_p, Npx_p), x2.dtype),
            grid=grid,
            in_specs=[
                pl.BlockSpec(memory_space=pltpu.MemorySpace.SMEM),              # weight (K,)
                pl.BlockSpec((Npx_p, Npx_p), lambda i: (0, 0), **lap_kwargs),   # resident L^T
                pl.BlockSpec((tm, Npx_p), lambda i: (i, 0)),                    # x row tile
            ],
            out_specs=pl.BlockSpec((tm, Npx_p), lambda i: (i, 0)),
            compiler_params=pltpu.CompilerParams(
                dimension_semantics=("parallel",),   # shard row tiles across TCs (v7x)
                vmem_limit_bytes=vmem_limit),
            cost_estimate=cost,
        )

    try:
        # L^T's index_map is constant -> single-buffer it (halves the dominant VMEM term).
        out = build(1)(w, lap_t, x2)
    except Exception as e:
        # Narrow fallback: only retry if the build rejected Buffered(1) itself.
        msg = str(e)
        if not any(s in msg for s in ("Buffered", "pipeline_mode", "buffer_count")):
            raise
        out = build(2)(w, lap_t, x2)

    out = out[:Nsamps, :Npx]
    return out.reshape(orig_shape)


def ref_cheb_conv(laplacian, x, weight):
    """Plain-JAX transcription of the PyTorch cheb_conv reference (2-D x)."""
    K = weight.shape[0]
    x0 = x.T                                 # (Npx, Nsamps)
    outs = [x0]
    if K >= 2:
        x1 = laplacian @ x0
        outs.append(x1)
        for _ in range(1, K - 1):
            x2 = 2.0 * (laplacian @ x1) - x0
            outs.append(x2)
            x0, x1 = x1, x2
    stacked = jnp.stack(outs, axis=0)        # (K, Npx, Nsamps)
    return jnp.einsum("kpn,k->np", stacked, weight)


if __name__ == "__main__":
    key = jax.random.PRNGKey(0)
    in_channels, K = 4, 3
    # HEALPix-like grid (nside=4 -> 192 vertices); deliberately NOT a multiple of 128/8
    # so the padding path is exercised. 96 rows = batch*channels folded into samples.
    Nsamps, Npx = 96, 192

    k1, k2, k3 = jax.random.split(key, 3)

    # Deterministic weight init mirroring ChebConv.__init__ (normal, std = sqrt(2/(Cin*K)))
    std = math.sqrt(2.0 / (in_channels * K))
    weight = jax.random.normal(k1, (K,), dtype=jnp.float32) * std

    # Synthetic symmetric "Laplacian" (dense stand-in for the registered sparse buffer).
    a = jax.random.normal(k2, (Npx, Npx), dtype=jnp.float32) * 0.05
    laplacian = 0.5 * (a + a.T)

    x = jax.random.normal(k3, (Nsamps, Npx), dtype=jnp.float32)
    ref = ref_cheb_conv(laplacian, x, weight)

    # Default path: bf16 MXU operands, f32 accumulation.
    out = jax.block_until_ready(spherical_cheb_conv(laplacian, x, weight))
    assert out.shape == (Nsamps, Npx)
    assert jnp.allclose(out, ref, atol=5e-2, rtol=5e-2), "bf16 Pallas kernel mismatch"

    # Exact-semantics f32 path (tight tolerance vs the plain-JAX reference).
    out_f32 = jax.block_until_ready(
        spherical_cheb_conv(laplacian, x, weight, matmul_dtype=jnp.float32))
    assert jnp.allclose(out_f32, ref, atol=1e-4, rtol=1e-4), "f32 Pallas kernel mismatch"

    # Batched input (batch x channels x vertices): leading dims are folded into rows.
    xb = x.reshape(2, 48, Npx)
    out_b = jax.block_until_ready(spherical_cheb_conv(laplacian, xb, weight))
    assert out_b.shape == xb.shape
    assert jnp.allclose(out_b.reshape(Nsamps, Npx), ref, atol=5e-2, rtol=5e-2), \
        "batched Pallas kernel mismatch"

    print("KERNEL_OK")
</pallas_src>

<mosaic_0001>
module attributes {stable_mosaic.version = 11 : i64} {
  func.func @kernel(%arg0: i32, %arg1: memref<3xf32, #tpu.memory_space<smem>>, %arg2: memref<256x256xbf16, #tpu.memory_space<vmem>>, %arg3: memref<96x256xf32, #tpu.memory_space<vmem>>, %arg4: memref<96x256xf32, #tpu.memory_space<vmem>>) attributes {dimension_semantics = [#tpu.dimension_semantics<parallel>], iteration_bounds = array<i64: 1>, scalar_prefetch = 0 : i64, scratch_operands = 0 : i64, tpu.core_type = #tpu.core_type<tc>, window_params = [{transform_indices = @transform_0, window_bounds = array<i64: 3>}, {pipeline_mode = #tpu.pipeline_mode<synchronous>, transform_indices = @transform_1, window_bounds = array<i64: 256, 256>}, {transform_indices = @transform_2, window_bounds = array<i64: 96, 256>}, {transform_indices = @transform_3, window_bounds = array<i64: 96, 256>}]} {
    %c0 = arith.constant 0 : index
    %c0_0 = arith.constant 0 : index
    %0 = vector.load %arg2[%c0, %c0_0] : memref<256x256xbf16, #tpu.memory_space<vmem>>, vector<256x256xbf16>
    %c0_1 = arith.constant 0 : index
    %c0_2 = arith.constant 0 : index
    %1 = vector.load %arg3[%c0_1, %c0_2] : memref<96x256xf32, #tpu.memory_space<vmem>>, vector<96x256xf32>
    %c0_3 = arith.constant 0 : index
    %2 = memref.load %arg1[%c0_3] : memref<3xf32, #tpu.memory_space<smem>>
    %3 = vector.broadcast %2 : f32 to vector<96x256xf32>
    %4 = arith.mulf %3, %1 : vector<96x256xf32>
    %5 = arith.truncf %1 : vector<96x256xf32> to vector<96x256xbf16>
    %cst = arith.constant dense<0.000000e+00> : vector<96x256xf32>
    %6 = tpu.matmul %5, %0, %cst {dimension_numbers = #tpu.dot_dimension_numbers<[1], [0], [0], [1], [0, 0, 1, 1], [], []>} : vector<96x256xbf16>, vector<256x256xbf16>, vector<96x256xf32> -> vector<96x256xf32>
    %c1 = arith.constant 1 : index
    %7 = memref.load %arg1[%c1] : memref<3xf32, #tpu.memory_space<smem>>
    %8 = vector.broadcast %7 : f32 to vector<96x256xf32>
    %9 = arith.mulf %8, %6 : vector<96x256xf32>
    %10 = arith.addf %4, %9 : vector<96x256xf32>
    %11 = arith.truncf %6 : vector<96x256xf32> to vector<96x256xbf16>
    %cst_4 = arith.constant dense<0.000000e+00> : vector<96x256xf32>
    %12 = tpu.matmul %11, %0, %cst_4 {dimension_numbers = #tpu.dot_dimension_numbers<[1], [0], [0], [1], [0, 0, 1, 1], [], []>} : vector<96x256xbf16>, vector<256x256xbf16>, vector<96x256xf32> -> vector<96x256xf32>
    %cst_5 = arith.constant 2.000000e+00 : f32
    %13 = vector.broadcast %cst_5 : f32 to vector<96x256xf32>
    %14 = arith.mulf %13, %12 : vector<96x256xf32>
    %15 = arith.extf %5 : vector<96x256xbf16> to vector<96x256xf32>
    %16 = arith.subf %14, %15 : vector<96x256xf32>
    %c2 = arith.constant 2 : index
    %17 = memref.load %arg1[%c2] : memref<3xf32, #tpu.memory_space<smem>>
    %18 = vector.broadcast %17 : f32 to vector<96x256xf32>
    %19 = arith.mulf %18, %16 : vector<96x256xf32>
    %20 = arith.addf %10, %19 : vector<96x256xf32>
    %c0_6 = arith.constant 0 : index
    %c0_7 = arith.constant 0 : index
    %21 = vector.load %arg4[%c0_6, %c0_7] : memref<96x256xf32, #tpu.memory_space<vmem>>, vector<96x256xf32>
    tpu.vector_store %arg4[%c0_6, %c0_7], %20 {strides = array<i32>} : memref<96x256xf32, #tpu.memory_space<vmem>>, vector<96x256xf32>,
    return
  }
  func.func @transform_0(%arg0: i32) -> i32 {
    %c0_i32 = arith.constant 0 : i32
    %c0_i32_0 = arith.constant 0 : i32
    return %c0_i32 : i32
  }
  func.func @transform_1(%arg0: i32) -> (i32, i32) {
    %c0_i32 = arith.constant 0 : i32
    %c0_i32_0 = arith.constant 0 : i32
    %c0_i32_1 = arith.constant 0 : i32
    return %c0_i32, %c0_i32_0 : i32, i32
  }
  func.func @transform_2(%arg0: i32) -> (i32, i32) {
    %c0_i32 = arith.constant 0 : i32
    %c0_i32_0 = arith.constant 0 : i32
    return %arg0, %c0_i32 : i32, i32
  }
  func.func @transform_3(%arg0: i32) -> (i32, i32) {
    %c0_i32 = arith.constant 0 : i32
    %c0_i32_0 = arith.constant 0 : i32
    return %arg0, %c0_i32 : i32, i32
  }
}

</mosaic_0001>

<bundles_post_ra>
// kernel: tpu_custom_call.1
= control target key start
LH: loop header
LB: loop body
LE: loop exit
PB: predicated region body
PF: predicated region fallthrough
CT: control target
= control target key end

     0   :  { %8 = vsyncpa [#allocation5], 0  ;;  %s1693_s0 = inlined_call_operand.hbm [shape: f32[3], index: 0, kind: input, shape index: {}]   ;;  %s1694_s1 = inlined_call_operand.hbm [shape: bf16[256,256], index: 1, kind: input, shape index: {}]   ;;  %s1695_s2 = inlined_call_operand.hbm [shape: f32[96,256], index: 2, kind: input, shape index: {}]   ;;  %s1696_s3 = inlined_call_operand.hbm [shape: f32[96,256], index: 3, kind: output, shape index: {}]  }
   0x1   :  { %9 = vsyncpa [#allocation3], 0 }
   0x2   :  { %10 = vsyncpa [#allocation8], 0 }
   0x3   :  { %11 = vsyncpa [#allocation4], 0  ;;  %s17_s14 = sshll.u32 %s1693_s0, 4  ;;  %s25_s17 = sshll.u32 %s1694_s1, 4  ;;  %s18_s14 = int_to_ptr.hbm [resolvable:$true] %s17_s14  ;;  %s26_s17 = int_to_ptr.hbm [resolvable:$true] %s25_s17 }
   0x4   :  { %s1177_s18 = smov [#allocation2]   ;;  %s1178_s19 = smov [#allocation6]  }
   0x5   :  { %20 = dma.hbm_to_smem %s18_s14, 16, %s1177_s18, [#allocation5]  }
   0x6   :  { %s27_s20 = sshll.u32 %s1178_s19, 4  ;;  %s1179_s21 = smov 128   ;;  %s28_s20 = int_to_ptr.vmem [resolvable:$true] %s27_s20 }
   0x7   :  { %s1180_s22 = smov 8   ;;  %s38_s25 = sshll.u32 %s1695_s2, 4  ;;  %s39_s25 = int_to_ptr.hbm [resolvable:$true] %s38_s25 }
   0x8   :  { %33 = dma.hbm_to_vmem [thread:$0]  %s26_s17, 4096, %s28_s20, [#allocation3], %s1179_s21, %s1179_s21, %s1180_s22  }
   0x9   :  { %s1181_s0 = smov [#allocation7]   ;;  %s1182_s27 = smov 256  }
   0xa   :  { %s40_s26 = sshll.u32 %s1181_s0, 4  ;;  %s1183_s28 = smov 16   ;;  %s41_s26 = int_to_ptr.vmem [resolvable:$true] %s40_s26 }
   0xb   :  { %46 = dma.hbm_to_vmem [thread:$0]  %s39_s25, 3072, %s41_s26, [#allocation8], %s1182_s27, %s1182_s27, %s1183_s28  }
   0xc   :  { %1169 = dma.done.wait [#allocation5], 16  }
   0xd   :  { %1170 = vsyncadd [#allocation5], 4294967280 }
   0xe   :  { %1171 = dma.done.wait [#allocation3], 4096  }
   0xf   :  { %1172 = vsyncadd [#allocation3], 4294963200 }
  0x10   :  { %1173 = dma.done.wait [#allocation8], 3072  }
  0x11   :  { %1174 = vsyncadd [#allocation8], 4294964224 }
  0x12   :  { %59 = sfence }
  0x13   :  { %v973_v0 = vld [vmem:[#allocation6 + $0x70] sm:$0xf]  ;;  %v1060_v1 = vld [vmem:[#allocation6 + $0x74] sm:$0xf0]  ;;  %v1059_v5 = vld [vmem:[#allocation6 + $0x74] sm:$0xf] }
  0x14   :  { %v1037_v2 = vld [vmem:[#allocation6 + $0xf0] sm:$0xf]  ;;  %v1217_v3 = vor.u32 %v1060_v1, %v973_v0  ;;  %v1076_v4 = vld [vmem:[#allocation6 + $0xf4] sm:$0xf0]  ;;  %v975_v6 = vld [vmem:[#allocation6 + $0x78] sm:$0xf0] }
  0x15   :  { %v1219_v7 = vor.u32 %v1076_v4, %v1037_v2  ;;  %v1221_v8 = vor.u32 %v1059_v5, %v975_v6  ;;  %v1075_v9 = vld [vmem:[#allocation6 + $0xf4] sm:$0xf]  ;;  %v1039_v10 = vld [vmem:[#allocation6 + $0xf8] sm:$0xf0]  ;;  %v965_v11 = vld [vmem:[#allocation6 + $0x60] sm:$0xf] }
  0x16   :  { %374 = vmatpush.bf16.msra.mxu0 %v1217_v3  ;;  %v1224_v12 = vor.u32 %v1075_v9, %v1039_v10  ;;  %v1058_v13 = vld [vmem:[#allocation6 + $0x64] sm:$0xf0]  ;;  %v1029_v14 = vld [vmem:[#allocation6 + $0xe0] sm:$0xf]  ;;  %v1057_v18 = vld [vmem:[#allocation6 + $0x64] sm:$0xf] }
  0x17   :  { %v1074_v15 = vld [vmem:[#allocation6 + $0xe4] sm:$0xf0]  ;;  %413 = vmatpush.bf16.msra.mxu1 %v1219_v7  ;;  %452 = vmatpush.bf16.msra.mxu2 %v1221_v8  ;;  %v1228_v16 = vor.u32 %v1058_v13, %v965_v11  ;;  %v967_v19 = vld [vmem:[#allocation6 + $0x68] sm:$0xf0]  ;;  %v1073_v20 = vld [vmem:[#allocation6 + $0xe4] sm:$0xf] }
  0x18   :  { %v1230_v17 = vor.u32 %v1074_v15, %v1029_v14  ;;  %491 = vmatpush.bf16.msra.mxu3 %v1224_v12  ;;  %v1233_v21 = vor.u32 %v1057_v18, %v967_v19  ;;  %v1031_v22 = vld [vmem:[#allocation6 + $0xe8] sm:$0xf0]  ;;  %v957_v23 = vld [vmem:[#allocation6 + $0x50] sm:$0xf]  ;;  %v1056_v24 = vld [vmem:[#allocation6 + $0x54] sm:$0xf0] }
  0x19   :  { %v1235_v25 = vor.u32 %v1073_v20, %v1031_v22  ;;  %v1021_v26 = vld [vmem:[#allocation6 + $0xd0] sm:$0xf]  ;;  %v1072_v27 = vld [vmem:[#allocation6 + $0xd4] sm:$0xf0]  ;;  %v1055_v28 = vld [vmem:[#allocation6 + $0x54] sm:$0xf]  ;;  %v1238_v29 = vor.u32 %v1056_v24, %v957_v23 }
  0x1a   :  { %375 = vmatpush.bf16.msra.mxu0 %v1228_v16  ;;  %v959_v30 = vld [vmem:[#allocation6 + $0x58] sm:$0xf0]  ;;  %v1071_v31 = vld [vmem:[#allocation6 + $0xd4] sm:$0xf]  ;;  %v1242_v33 = vor.u32 %v1072_v27, %v1021_v26  ;;  %v949_v35 = vld [vmem:[#allocation6 + $0x40] sm:$0xf] }
  0x1b   :  { %v1023_v32 = vld [vmem:[#allocation6 + $0xd8] sm:$0xf0]  ;;  %414 = vmatpush.bf16.msra.mxu1 %v1230_v17  ;;  %453 = vmatpush.bf16.msra.mxu2 %v1233_v21  ;;  %v1244_v34 = vor.u32 %v1055_v28, %v959_v30  ;;  %v1054_v36 = vld [vmem:[#allocation6 + $0x44] sm:$0xf0]  ;;  %v1013_v37 = vld [vmem:[#allocation6 + $0xc0] sm:$0xf] }
  0x1c   :  { %492 = vmatpush.bf16.msra.mxu3 %v1235_v25  ;;  %v1247_v38 = vor.u32 %v1071_v31, %v1023_v32  ;;  %v1070_v39 = vld [vmem:[#allocation6 + $0xc4] sm:$0xf0]  ;;  %v1053_v40 = vld [vmem:[#allocation6 + $0x44] sm:$0xf]  ;;  %v951_v41 = vld [vmem:[#allocation6 + $0x48] sm:$0xf0]  ;;  %v1250_v44 = vor.u32 %v1054_v36, %v949_v35 }
  0x1d   :  { %v1069_v42 = vld [vmem:[#allocation6 + $0xc4] sm:$0xf]  ;;  %v1015_v43 = vld [vmem:[#allocation6 + $0xc8] sm:$0xf0]  ;;  %v1254_v45 = vor.u32 %v1070_v39, %v1013_v37  ;;  %v1256_v46 = vor.u32 %v1053_v40, %v951_v41  ;;  %v941_v47 = vld [vmem:[#allocation6 + $0x30] sm:$0xf] }
  0x1e   :  { %376 = vmatpush.bf16.msra.mxu0 %v1238_v29  ;;  %v1052_v48 = vld [vmem:[#allocation6 + $0x34] sm:$0xf0]  ;;  %v1005_v49 = vld [vmem:[#allocation6 + $0xb0] sm:$0xf]  ;;  %v1259_v50 = vor.u32 %v1069_v42, %v1015_v43  ;;  %v1051_v52 = vld [vmem:[#allocation6 + $0x34] sm:$0xf] }
  0x1f   :  { %415 = vmatpush.bf16.msra.mxu1 %v1242_v33  ;;  %454 = vmatpush.bf16.msra.mxu2 %v1244_v34  ;;  %v1068_v51 = vld [vmem:[#allocation6 + $0xb4] sm:$0xf0]  ;;  %v943_v53 = vld [vmem:[#allocation6 + $0x38] sm:$0xf0]  ;;  %v1067_v54 = vld [vmem:[#allocation6 + $0xb4] sm:$0xf]  ;;  %v1262_v56 = vor.u32 %v1052_v48, %v941_v47 }
  0x20   :  { %493 = vmatpush.bf16.msra.mxu3 %v1247_v38  ;;  %v1007_v55 = vld [vmem:[#allocation6 + $0xb8] sm:$0xf0]  ;;  %v1266_v57 = vor.u32 %v1068_v51, %v1005_v49  ;;  %v1268_v58 = vor.u32 %v1051_v52, %v943_v53  ;;  %v933_v59 = vld [vmem:[#allocation6 + $0x20] sm:$0xf]  ;;  %v1050_v60 = vld [vmem:[#allocation6 + $0x24] sm:$0xf0] }
  0x21   :  { %v997_v61 = vld [vmem:[#allocation6 + $0xa0] sm:$0xf]  ;;  %v1271_v62 = vor.u32 %v1067_v54, %v1007_v55  ;;  %v1066_v63 = vld [vmem:[#allocation6 + $0xa4] sm:$0xf0]  ;;  %v1049_v0 = vld [vmem:[#allocation6 + $0x24] sm:$0xf]  ;;  %v1274_v5 = vor.u32 %v1050_v60, %v933_v59 }
  0x22   :  { %377 = vmatpush.bf16.msra.mxu0 %v1250_v44  ;;  %v935_v1 = vld [vmem:[#allocation6 + $0x28] sm:$0xf0]  ;;  %v1065_v2 = vld [vmem:[#allocation6 + $0xa4] sm:$0xf]  ;;  %v925_v6 = vld [vmem:[#allocation6 + $0x10] sm:$0xf]  ;;  %v1278_v11 = vor.u32 %v1066_v63, %v997_v61 }
  0x23   :  { %416 = vmatpush.bf16.msra.mxu1 %v1254_v45  ;;  %455 = vmatpush.bf16.msra.mxu2 %v1256_v46  ;;  %v999_v4 = vld [vmem:[#allocation6 + $0xa8] sm:$0xf0]  ;;  %v1048_v9 = vld [vmem:[#allocation6 + $0x14] sm:$0xf0]  ;;  %v989_v10 = vld [vmem:[#allocation6 + $0x90] sm:$0xf]  ;;  %v1280_v13 = vor.u32 %v1049_v0, %v935_v1 }
  0x24   :  { %494 = vmatpush.bf16.msra.mxu3 %v1259_v50  ;;  %v1064_v14 = vld [vmem:[#allocation6 + $0x94] sm:$0xf0]  ;;  %v1047_v15 = vld [vmem:[#allocation6 + $0x14] sm:$0xf]  ;;  %v927_v18 = vld [vmem:[#allocation6 + $0x18] sm:$0xf0]  ;;  %v1283_v19 = vor.u32 %v1065_v2, %v999_v4  ;;  %v1298_v30 = vor.u32 %v1048_v9, %v925_v6 }
  0x25   :  { %v1063_v20 = vld [vmem:[#allocation6 + $0x94] sm:$0xf]  ;;  %v1285_v22 = vld [vmem:[#allocation7] sm:$0xff]  ;;  %v1287_v23 = vld [vmem:[#allocation7 + $0x8] sm:$0xff]  ;;  %v1306_v32 = vor.u32 %v1064_v14, %v989_v10  ;;  %v1308_v35 = vor.u32 %v1047_v15, %v927_v18  ;;  %s116_s1 = sld [smem:[#allocation2]]  ;;  %s1184_s30 = smov [#allocation9]  }
  0x26   :  { %378 = vmatpush.bf16.msra.mxu0 %v1262_v56  ;;  %v991_v24 = vld [vmem:[#allocation6 + $0x98] sm:$0xf0]  ;;  %v1289_v26 = vld [vmem:[#allocation7 + $0x10] sm:$0xff]  ;;  %v1295_v28 = vpack.c.bf16 %v1287_v23, %v1285_v22  ;;  %v917_v36 = vld [vmem:[#allocation6] sm:$0xf]  ;;  %s1043_s2 = sld [smem:[#allocation2 + $0x1]] }
  0x27   :  { %417 = vmatpush.bf16.msra.mxu1 %v1266_v57  ;;  %456 = vmatpush.bf16.msra.mxu2 %v1268_v58  ;;  %v1291_v27 = vld [vmem:[#allocation7 + $0x18] sm:$0xff]  ;;  %v1046_v37 = vld [vmem:[#allocation6 + $0x4] sm:$0xf0]  ;;  %v981_v39 = vld [vmem:[#allocation6 + $0x80] sm:$0xf]  ;;  %v1311_v40 = vor.u32 %v1063_v20, %v991_v24  ;;  %s1044_s29 = sld [smem:[#allocation2 + $0x2]] }
  0x28   :  { %495 = vmatpush.bf16.msra.mxu3 %v1271_v62  ;;  %v1302_v31 = vpack.c.bf16 %v1291_v27, %v1289_v26  ;;  %v1062_v41 = vld [vmem:[#allocation6 + $0x84] sm:$0xf0]  ;;  %v1045_v42 = vld [vmem:[#allocation6 + $0x4] sm:$0xf]  ;;  %v919_v43 = vld [vmem:[#allocation6 + $0x8] sm:$0xf0]  ;;  %v166_v49 = vunpack.c.l.b16 %v1295_v28  ;;  %v1316_v52 = vor.u32 %v1046_v37, %v917_v36  ;;  %v167_v53 = vunpack.c.h.b16 %v1295_v28 }
  0x29   :  { %v1061_v47 = vld [vmem:[#allocation6 + $0x84] sm:$0xf]  ;;  %v983_v48 = vld [vmem:[#allocation6 + $0x88] sm:$0xf0]  ;;  %v1322_v55 = vor.u32 %v1062_v41, %v981_v39  ;;  %v1324_v59 = vor.u32 %v1045_v42, %v919_v43  ;;  %v1339_v2 = vld [vmem:[#allocation7 + $0x30] sm:$0xff]  ;;  %s898_s4 = sshll.u32 %s1184_s30, 4  ;;  %s899_s4 = int_to_ptr.vmem [resolvable:$true] %s898_s4 }
  0x2a   :  { %379 = vmatpush.bf16.msra.mxu0 %v1274_v5  ;;  %v168_v51 = vunpack.c.l.b16 %v1302_v31  ;;  %v169_v54 = vunpack.c.h.b16 %v1302_v31  ;;  %v1327_v60 = vor.u32 %v1061_v47, %v983_v48  ;;  %v1334_v0 = vld [vmem:[#allocation7 + $0x20] sm:$0xff]  ;;  %v1337_v1 = vld [vmem:[#allocation7 + $0x28] sm:$0xff]  ;;  %v1341_v4 = vld [vmem:[#allocation7 + $0x38] sm:$0xff]  ;;  %s900_s7 = sshll.u32 %s1696_s3, 4  ;;  %s901_s7 = int_to_ptr.hbm [resolvable:$true] %s900_s7 }
  0x2b   :  { %418 = vmatpush.bf16.msra.mxu1 %v1278_v11  ;;  %457 = vmatpush.bf16.msra.mxu2 %v1280_v13  ;;  %v1409_v9 = vld [vmem:[#allocation7 + $0x70] sm:$0xff]  ;;  %v1411_v10 = vld [vmem:[#allocation7 + $0x78] sm:$0xff] }
  0x2c   :  { %496 = vmatpush.bf16.msra.mxu3 %v1283_v19  ;;  %v190_v61 = vpack.c.b16 %v168_v51, %v166_v49  ;;  %v191_v63 = vpack.c.b16 %v169_v54, %v167_v53  ;;  %v1431_v36 = vld [vmem:[#allocation7 + $0x98] sm:$0xff]  ;;  %v1445_v49 = vld [vmem:[#allocation7 + $0xa0] sm:$0xff]  ;;  %v1447_v51 = vld [vmem:[#allocation7 + $0xa8] sm:$0xff] }
  0x2d   :  { %1719 = vst [vmem:[#allocation16_spill] sm:$0xff] %v1431_v36  ;;  %v1451_v53 = vld [vmem:[#allocation7 + $0xb8] sm:$0xff]  ;;  %v1455_v54 = vpack.c.bf16 %v1447_v51, %v1445_v49 }
  0x2e   :  { %380 = vmatpush.bf16.msra.mxu0 %v1298_v30  ;;  %1721 = vst [vmem:[#allocation18_spill] sm:$0xff] %v1445_v49 }
  0x2f   :  { %419 = vmatpush.bf16.msra.mxu1 %v1306_v32  ;;  %458 = vmatpush.bf16.msra.mxu2 %v1308_v35  ;;  %1722 = vst [vmem:[#allocation19_spill] sm:$0xff] %v1447_v51 }
  0x30   :  { %497 = vmatpush.bf16.msra.mxu3 %v1311_v40  ;;  %1724 = vst [vmem:[#allocation21_spill] sm:$0xff] %v1451_v53 }
  0x31   :  { %1725 = vst [vmem:[#allocation22_spill] sm:$0xff] %v1455_v54 }
  0x32   :  { %381 = vmatpush.bf16.msra.mxu0 %v1316_v52 }
  0x33   :  { %420 = vmatpush.bf16.msra.mxu1 %v1322_v55  ;;  %459 = vmatpush.bf16.msra.mxu2 %v1324_v59 }
  0x34   :  { %498 = vmatpush.bf16.msra.mxu3 %v1327_v60 }
  0x35   :  { %382 = vmatmul.bf16.vlgmr.msra.gmra.mxu0 %v190_v61 }
  0x36   :  { %421 = vmatmul.bf16.vlgmr.msra.gmra.mxu1 %v191_v63  ;;  %460 = vmatmul.bf16.vlgmr.msra.gmra.mxu2 %v190_v61  ;;  %v187_v61 = vunpack.c.h.b16 %v1455_v54 }
  0x37   :  { %670 = vmatpush.bf16.msrb.mxu2 %v1221_v8  ;;  %499 = vmatmul.bf16.vlgmr.msra.gmra.mxu3 %v191_v63  ;;  %v1348_v8 = vpack.c.bf16 %v1337_v1, %v1334_v0 }
  0x38   :  { %709 = vmatpush.bf16.msrb.mxu3 %v1224_v12  ;;  %592 = vmatpush.bf16.msrb.mxu0 %v1217_v3  ;;  %v1352_v12 = vpack.c.bf16 %v1341_v4, %v1339_v2 }
  0x39   :  { %631 = vmatpush.bf16.msrb.mxu1 %v1219_v7  ;;  %v170_v3 = vunpack.c.l.b16 %v1348_v8 }
  0x3a   :  { %v172_v7 = vunpack.c.l.b16 %v1352_v12  ;;  %v173_v6 = vunpack.c.h.b16 %v1352_v12 }
  0x3b   :  { %671 = vmatpush.bf16.msrb.mxu2 %v1233_v21  ;;  %v171_v21 = vunpack.c.h.b16 %v1348_v8 }
  0x3c   :  { %710 = vmatpush.bf16.msrb.mxu3 %v1235_v25  ;;  %593 = vmatpush.bf16.msrb.mxu0 %v1228_v16  ;;  %v192_v16 = vpack.c.b16 %v172_v7, %v170_v3  ;;  %v1370_v25 = vld [vmem:[#allocation7 + $0x40] sm:$0xff] }
  0x3d   :  { %632 = vmatpush.bf16.msrb.mxu1 %v1230_v17  ;;  %v193_v17 = vpack.c.b16 %v173_v6, %v171_v21 }
  0x3f   :  { %672 = vmatpush.bf16.msrb.mxu2 %v1244_v34  ;;  %v1377_v34 = vld [vmem:[#allocation7 + $0x58] sm:$0xff] }
  0x40   :  { %711 = vmatpush.bf16.msrb.mxu3 %v1247_v38  ;;  %594 = vmatpush.bf16.msrb.mxu0 %v1238_v29  ;;  %v1373_v29 = vld [vmem:[#allocation7 + $0x48] sm:$0xff] }
  0x41   :  { %633 = vmatpush.bf16.msrb.mxu1 %v1242_v33  ;;  %v1375_v33 = vld [vmem:[#allocation7 + $0x50] sm:$0xff]  ;;  %v1384_v38 = vpack.c.bf16 %v1373_v29, %v1370_v25 }
  0x43   :  { %673 = vmatpush.bf16.msrb.mxu2 %v1256_v46 }
  0x44   :  { %712 = vmatpush.bf16.msrb.mxu3 %v1259_v50  ;;  %595 = vmatpush.bf16.msrb.mxu0 %v1250_v44  ;;  %v1388_v44 = vpack.c.bf16 %v1377_v34, %v1375_v33  ;;  %v175_v50 = vunpack.c.h.b16 %v1384_v38 }
  0x45   :  { %634 = vmatpush.bf16.msrb.mxu1 %v1254_v45  ;;  %387 = vmatmul.bf16.gmra.mxu0 %v192_v16  ;;  %v174_v45 = vunpack.c.l.b16 %v1384_v38 }
  0x46   :  { %426 = vmatmul.bf16.gmra.mxu1 %v193_v17  ;;  %465 = vmatmul.bf16.gmra.mxu2 %v192_v16  ;;  %v176_v46 = vunpack.c.l.b16 %v1388_v44 }
  0x47   :  { %674 = vmatpush.bf16.msrb.mxu2 %v1268_v58  ;;  %504 = vmatmul.bf16.gmra.mxu3 %v193_v17 }
  0x48   :  { %713 = vmatpush.bf16.msrb.mxu3 %v1271_v62  ;;  %596 = vmatpush.bf16.msrb.mxu0 %v1262_v56  ;;  %v177_v56 = vunpack.c.h.b16 %v1388_v44  ;;  %v1405_v62 = vld [vmem:[#allocation7 + $0x60] sm:$0xff] }
  0x49   :  { %635 = vmatpush.bf16.msrb.mxu1 %v1266_v57  ;;  %v194_v57 = vpack.c.b16 %v176_v46, %v174_v45 }
  0x4a   :  { %v195_v58 = vpack.c.b16 %v177_v56, %v175_v50 }
  0x4b   :  { %675 = vmatpush.bf16.msrb.mxu2 %v1280_v13  ;;  %v1419_v13 = vpack.c.bf16 %v1411_v10, %v1409_v9 }
  0x4c   :  { %714 = vmatpush.bf16.msrb.mxu3 %v1283_v19  ;;  %597 = vmatpush.bf16.msrb.mxu0 %v1274_v5  ;;  %v1407_v5 = vld [vmem:[#allocation7 + $0x68] sm:$0xff] }
  0x4d   :  { %636 = vmatpush.bf16.msrb.mxu1 %v1278_v11  ;;  %v1415_v11 = vpack.c.bf16 %v1407_v5, %v1405_v62  ;;  %v180_v15 = vunpack.c.l.b16 %v1419_v13  ;;  %v181_v19 = vunpack.c.h.b16 %v1419_v13 }
  0x4f   :  { %676 = vmatpush.bf16.msrb.mxu2 %v1308_v35  ;;  %v178_v14 = vunpack.c.l.b16 %v1415_v11  ;;  %v179_v18 = vunpack.c.h.b16 %v1415_v11  ;;  %v1429_v35 = vld [vmem:[#allocation7 + $0x90] sm:$0xff] }
  0x50   :  { %715 = vmatpush.bf16.msrb.mxu3 %v1311_v40  ;;  %598 = vmatpush.bf16.msrb.mxu0 %v1298_v30  ;;  %v1425_v30 = vld [vmem:[#allocation7 + $0x80] sm:$0xff]  ;;  %1718 = vst [vmem:[#allocation15_spill] sm:$0xff] %v1429_v35  ;;  %v1439_v39 = vpack.c.bf16 %v1431_v36, %v1429_v35 }
  0x51   :  { %637 = vmatpush.bf16.msrb.mxu1 %v1306_v32  ;;  %v196_v20 = vpack.c.b16 %v180_v15, %v178_v14  ;;  %v197_v24 = vpack.c.b16 %v181_v19, %v179_v18  ;;  %v1427_v32 = vld [vmem:[#allocation7 + $0x88] sm:$0xff] }
  0x52   :  { %1717 = vst [vmem:[#allocation14_spill] sm:$0xff] %v1427_v32  ;;  %v1435_v37 = vpack.c.bf16 %v1427_v32, %v1425_v30  ;;  %v184_v41 = vunpack.c.l.b16 %v1439_v39  ;;  %v185_v43 = vunpack.c.h.b16 %v1439_v39 }
  0x53   :  { %677 = vmatpush.bf16.msrb.mxu2 %v1324_v59  ;;  %1720 = vst [vmem:[#allocation17_spill] sm:$0xff] %v1439_v39  ;;  %v186_v59 = vunpack.c.l.b16 %v1455_v54 }
  0x54   :  { %716 = vmatpush.bf16.msrb.mxu3 %v1327_v60  ;;  %599 = vmatpush.bf16.msrb.mxu0 %v1316_v52  ;;  %v182_v40 = vunpack.c.l.b16 %v1435_v37  ;;  %v183_v42 = vunpack.c.h.b16 %v1435_v37  ;;  %v1449_v52 = vld [vmem:[#allocation7 + $0xb0] sm:$0xff] }
  0x55   :  { %638 = vmatpush.bf16.msrb.mxu1 %v1322_v55  ;;  %392 = vmatmul.bf16.gmra.mxu0 %v194_v57  ;;  %1723 = vst [vmem:[#allocation20_spill] sm:$0xff] %v1449_v52  ;;  %v1459_v55 = vpack.c.bf16 %v1451_v53, %v1449_v52 }
  0x56   :  { %431 = vmatmul.bf16.gmra.mxu1 %v195_v58  ;;  %470 = vmatmul.bf16.gmra.mxu2 %v194_v57  ;;  %v198_v47 = vpack.c.b16 %v184_v41, %v182_v40  ;;  %v199_v48 = vpack.c.b16 %v185_v43, %v183_v42 }
  0x57   :  { %509 = vmatmul.bf16.gmra.mxu3 %v195_v58  ;;  %1726 = vst [vmem:[#allocation23_spill] sm:$0xff] %v1459_v55  ;;  %v188_v60 = vunpack.c.l.b16 %v1459_v55  ;;  %v189_v63 = vunpack.c.h.b16 %v1459_v55 }
  0x59   :  { %v200_v3 = vpack.c.b16 %v188_v60, %v186_v59  ;;  %v201_v7 = vpack.c.b16 %v189_v63, %v187_v61 }
  0x65   :  { %397 = vmatmul.bf16.gmra.mxu0 %v196_v20 }
  0x66   :  { %436 = vmatmul.bf16.gmra.mxu1 %v197_v24  ;;  %475 = vmatmul.bf16.gmra.mxu2 %v196_v20 }
  0x67   :  { %514 = vmatmul.bf16.gmra.mxu3 %v197_v24 }
  0x75   :  { %402 = vmatmul.bf16.gmra.mxu0 %v198_v47 }
  0x76   :  { %441 = vmatmul.bf16.gmra.mxu1 %v199_v48  ;;  %480 = vmatmul.bf16.gmra.mxu2 %v198_v47 }
  0x77   :  { %519 = vmatmul.bf16.gmra.mxu3 %v199_v48 }
  0x85   :  { %407 = vmatmul.bf16.gmra.mxu0 %v200_v3 }
  0x86   :  { %446 = vmatmul.bf16.gmra.mxu1 %v201_v7  ;;  %485 = vmatmul.bf16.gmra.mxu2 %v200_v3 }
  0x87   :  { %524 = vmatmul.bf16.gmra.mxu3 %v201_v7 }
  0xb2   :  { %v383_v21 = vpop.f32.mrf.mxu0 }
  0xb3   :  { %v422_v6 = vpop.f32.mrf.mxu1 }
  0xb4   :  { %v1465_v50 = vadd.f32 %v422_v6, %v383_v21 }
  0xb9   :  { %v461_v16 = vpop.f32.mrf.mxu2 }
  0xba   :  { %v500_v17 = vpop.f32.mrf.mxu3  ;;  %v385_v45 = vpop.f32.mrf.mxu0 }
  0xbb   :  { %v424_v46 = vpop.f32.mrf.mxu1  ;;  %v1471_v18 = vadd.f32 %v500_v17, %v461_v16 }
  0xbc   :  { %v1467_v56 = vadd.f32 %v424_v46, %v385_v45 }
  0xbe   :  { %v580_v57 = vpack.c.bf16 %v1467_v56, %v1465_v50 }
  0xc0   :  { %600 = vmatmul.bf16.vlgmr.msrb.gmra.mxu0 %v580_v57  ;;  %678 = vmatmul.bf16.vlgmr.msrb.gmra.mxu2 %v580_v57 }
  0xc1   :  { %v463_v58 = vpop.f32.mrf.mxu2 }
  0xc2   :  { %v502_v14 = vpop.f32.mrf.mxu3  ;;  %v388_v15 = vpop.f32.mrf.mxu0 }
  0xc3   :  { %v1473_v19 = vadd.f32 %v502_v14, %v463_v58  ;;  %v427_v20 = vpop.f32.mrf.mxu1 }
  0xc4   :  { %v1477_v47 = vadd.f32 %v427_v20, %v388_v15 }
  0xc5   :  { %v581_v24 = vpack.c.bf16 %v1473_v19, %v1471_v18 }
  0xc7   :  { %639 = vmatmul.bf16.vlgmr.msrb.gmra.mxu1 %v581_v24  ;;  %717 = vmatmul.bf16.vlgmr.msrb.gmra.mxu3 %v581_v24 }
  0xc9   :  { %v466_v40 = vpop.f32.mrf.mxu2 }
  0xca   :  { %v505_v41 = vpop.f32.mrf.mxu3  ;;  %v390_v42 = vpop.f32.mrf.mxu0 }
  0xcb   :  { %v429_v43 = vpop.f32.mrf.mxu1  ;;  %v1483_v3 = vadd.f32 %v505_v41, %v466_v40 }
  0xcc   :  { %v1479_v48 = vadd.f32 %v429_v43, %v390_v42 }
  0xce   :  { %v582_v59 = vpack.c.bf16 %v1479_v48, %v1477_v47 }
  0xd0   :  { %605 = vmatmul.bf16.gmra.mxu0 %v582_v59  ;;  %683 = vmatmul.bf16.gmra.mxu2 %v582_v59 }
  0xd1   :  { %v468_v60 = vpop.f32.mrf.mxu2 }
  0xd2   :  { %v507_v61 = vpop.f32.mrf.mxu3  ;;  %v393_v63 = vpop.f32.mrf.mxu0 }
  0xd3   :  { %v1485_v7 = vadd.f32 %v507_v61, %v468_v60  ;;  %v432_v21 = vpop.f32.mrf.mxu1 }
  0xd4   :  { %v1489_v57 = vadd.f32 %v432_v21, %v393_v63 }
  0xd5   :  { %v583_v6 = vpack.c.bf16 %v1485_v7, %v1483_v3 }
  0xd7   :  { %644 = vmatmul.bf16.gmra.mxu1 %v583_v6  ;;  %722 = vmatmul.bf16.gmra.mxu3 %v583_v6 }
  0xd9   :  { %v471_v16 = vpop.f32.mrf.mxu2 }
  0xda   :  { %v510_v17 = vpop.f32.mrf.mxu3  ;;  %v395_v45 = vpop.f32.mrf.mxu0 }
  0xdb   :  { %v434_v46 = vpop.f32.mrf.mxu1  ;;  %v1495_v40 = vadd.f32 %v510_v17, %v471_v16 }
  0xdc   :  { %v1491_v58 = vadd.f32 %v434_v46, %v395_v45 }
  0xde   :  { %v584_v14 = vpack.c.bf16 %v1491_v58, %v1489_v57 }
  0xe0   :  { %610 = vmatmul.bf16.gmra.mxu0 %v584_v14  ;;  %688 = vmatmul.bf16.gmra.mxu2 %v584_v14 }
  0xe1   :  { %v473_v15 = vpop.f32.mrf.mxu2 }
  0xe2   :  { %v512_v20 = vpop.f32.mrf.mxu3  ;;  %v398_v24 = vpop.f32.mrf.mxu0 }
  0xe3   :  { %v1497_v41 = vadd.f32 %v512_v20, %v473_v15  ;;  %v437_v42 = vpop.f32.mrf.mxu1 }
  0xe4   :  { %v1501_v21 = vadd.f32 %v437_v42, %v398_v24 }
  0xe5   :  { %v585_v43 = vpack.c.bf16 %v1497_v41, %v1495_v40 }
  0xe7   :  { %649 = vmatmul.bf16.gmra.mxu1 %v585_v43  ;;  %727 = vmatmul.bf16.gmra.mxu3 %v585_v43 }
  0xe9   :  { %v476_v59 = vpop.f32.mrf.mxu2 }
  0xea   :  { %v515_v60 = vpop.f32.mrf.mxu3  ;;  %v400_v61 = vpop.f32.mrf.mxu0 }
  0xeb   :  { %v439_v63 = vpop.f32.mrf.mxu1  ;;  %v1507_v14 = vadd.f32 %v515_v60, %v476_v59 }
  0xec   :  { %v1503_v6 = vadd.f32 %v439_v63, %v400_v61 }
  0xee   :  { %v586_v16 = vpack.c.bf16 %v1503_v6, %v1501_v21 }
  0xf0   :  { %615 = vmatmul.bf16.gmra.mxu0 %v586_v16  ;;  %693 = vmatmul.bf16.gmra.mxu2 %v586_v16 }
  0xf1   :  { %v478_v17 = vpop.f32.mrf.mxu2 }
  0xf2   :  { %v517_v45 = vpop.f32.mrf.mxu3  ;;  %v403_v46 = vpop.f32.mrf.mxu0 }
  0xf3   :  { %v1509_v15 = vadd.f32 %v517_v45, %v478_v17  ;;  %v442_v20 = vpop.f32.mrf.mxu1 }
  0xf4   :  { %v1513_v53 = vadd.f32 %v442_v20, %v403_v46 }
  0xf5   :  { %v587_v43 = vpack.c.bf16 %v1509_v15, %v1507_v14 }
  0xf7   :  { %654 = vmatmul.bf16.gmra.mxu1 %v587_v43  ;;  %732 = vmatmul.bf16.gmra.mxu3 %v587_v43 }
  0xf9   :  { %v481_v24 = vpop.f32.mrf.mxu2 }
  0xfa   :  { %v520_v42 = vpop.f32.mrf.mxu3  ;;  %v405_v61 = vpop.f32.mrf.mxu0 }
  0xfb   :  { %v444_v63 = vpop.f32.mrf.mxu1  ;;  %v1519_v52 = vadd.f32 %v520_v42, %v481_v24 }
  0xfc   :  { %v1515_v16 = vadd.f32 %v444_v63, %v405_v61 }
  0xfd   :  { %1728 = vst [vmem:[#allocation25_spill] sm:$0xff] %v1519_v52 }
  0xfe   :  { %1727 = vst [vmem:[#allocation24_spill] sm:$0xff] %v1515_v16  ;;  %v588_v59 = vpack.c.bf16 %v1515_v16, %v1513_v53 }
 0x100   :  { %620 = vmatmul.bf16.gmra.mxu0 %v588_v59  ;;  %698 = vmatmul.bf16.gmra.mxu2 %v588_v59 }
 0x101   :  { %v483_v60 = vpop.f32.mrf.mxu2 }
 0x102   :  { %v522_v17 = vpop.f32.mrf.mxu3  ;;  %v408_v45 = vpop.f32.mrf.mxu0 }
 0x103   :  { %v1521_v55 = vadd.f32 %v522_v17, %v483_v60  ;;  %v447_v43 = vpop.f32.mrf.mxu1 }
 0x104   :  { %v1525_v49 = vadd.f32 %v447_v43, %v408_v45 }
 0x105   :  { %1729 = vst [vmem:[#allocation26_spill] sm:$0xff] %v1521_v55  ;;  %v589_v51 = vpack.c.bf16 %v1521_v55, %v1519_v52 }
 0x106   :  { %1730 = vst [vmem:[#allocation27_spill] sm:$0xff] %v1525_v49 }
 0x107   :  { %659 = vmatmul.bf16.gmra.mxu1 %v589_v51  ;;  %737 = vmatmul.bf16.gmra.mxu3 %v589_v51 }
 0x109   :  { %v486_v46 = vpop.f32.mrf.mxu2 }
 0x10a   :  { %v525_v20 = vpop.f32.mrf.mxu3  ;;  %v410_v61 = vpop.f32.mrf.mxu0 }
 0x10b   :  { %v449_v63 = vpop.f32.mrf.mxu1  ;;  %v1531_v17 = vadd.f32 %v525_v20, %v486_v46  ;;  %v772_v46 = vunpack.c.l.bf16 %v1295_v28 }
 0x10c   :  { %v1527_v59 = vadd.f32 %v449_v63, %v410_v61  ;;  %v1537_v61 = vstv %s116_s1  ;;  %v1539_v63 = vstv %s1043_s2 }
 0x10d   :  { %1732 = vst [vmem:[#allocation29_spill] sm:$0xff] %v1531_v17  ;;  %v119_v35 = vmul.f32 %v1537_v61, %v1287_v23 }
 0x10e   :  { %1731 = vst [vmem:[#allocation28_spill] sm:$0xff] %v1527_v59  ;;  %v590_v24 = vpack.c.bf16 %v1527_v59, %v1525_v49 }
 0x110   :  { %625 = vmatmul.bf16.gmra.mxu0 %v590_v24  ;;  %703 = vmatmul.bf16.gmra.mxu2 %v590_v24 }
 0x111   :  { %v488_v42 = vpop.f32.mrf.mxu2 }
 0x112   :  { %v527_v60 = vpop.f32.mrf.mxu3 }
 0x113   :  { %v1533_v54 = vadd.f32 %v527_v60, %v488_v42  ;;  %v118_v42 = vmul.f32 %v1537_v61, %v1285_v22  ;;  %v532_v60 = vmul.f32 %v1539_v63, %v1465_v50  ;;  %v533_v22 = vmul.f32 %v1539_v63, %v1471_v18 }
 0x115   :  { %1733 = vst [vmem:[#allocation30_spill] sm:$0xff] %v1533_v54  ;;  %v591_v51 = vpack.c.bf16 %v1533_v54, %v1531_v17  ;;  %v1546_v54 = vstv %s1044_s29  ;;  %v556_v55 = vadd.f32 %v532_v60, %v118_v42  ;;  %v557_v23 = vadd.f32 %v533_v22, %v119_v35 }
 0x117   :  { %664 = vmatmul.bf16.gmra.mxu1 %v591_v51  ;;  %742 = vmatmul.bf16.gmra.mxu3 %v591_v51 }
 0x13d   :  { %v601_v45 = vpop.f32.mrf.mxu0 }
 0x143   :  { %v679_v43 = vpop.f32.mrf.mxu2 }
 0x144   :  { %v640_v24 = vpop.f32.mrf.mxu1 }
 0x145   :  { %v641_v59 = vadd.f32 %v640_v24, %v601_v45  ;;  %v603_v20 = vpop.f32.mrf.mxu0  ;;  %v773_v45 = vunpack.c.h.bf16 %v1295_v28  ;;  %v534_v28 = vmul.f32 %v1539_v63, %v1467_v56  ;;  %v535_v56 = vmul.f32 %v1539_v63, %v1473_v19 }
 0x147   :  { %v748_v51 = vmul.f32 2.0, %v641_v59 }
 0x149   :  { %v796_v17 = vsub.f32 %v748_v51, %v772_v46  ;;  %v774_v46 = vunpack.c.l.bf16 %v1302_v31 }
 0x14a   :  { %v718_v49 = vpop.f32.mrf.mxu3 }
 0x14b   :  { %v822_v36 = vmul.f32 %v1546_v54, %v796_v17  ;;  %v719_v16 = vadd.f32 %v718_v49, %v679_v43  ;;  %v681_v24 = vpop.f32.mrf.mxu2  ;;  %v120_v17 = vmul.f32 %v1537_v61, %v1289_v26  ;;  %v121_v26 = vmul.f32 %v1537_v61, %v1291_v27 }
 0x14c   :  { %v642_v39 = vpop.f32.mrf.mxu1 }
 0x14d   :  { %v846_v50 = vadd.f32 %v822_v36, %v556_v55  ;;  %v749_v59 = vmul.f32 2.0, %v719_v16  ;;  %v643_v52 = vadd.f32 %v642_v39, %v603_v20  ;;  %v606_v51 = vpop.f32.mrf.mxu0  ;;  %v558_v60 = vadd.f32 %v534_v28, %v120_v17 }
 0x14e   :  { %v775_v20 = vunpack.c.h.bf16 %v1302_v31  ;;  %v536_v31 = vmul.f32 %v1539_v63, %v1477_v47  ;;  %v559_v17 = vadd.f32 %v535_v56, %v121_v26  ;;  %v537_v47 = vmul.f32 %v1539_v63, %v1483_v3 }
 0x14f   :  { %870 = vst [vmem:[#allocation9] sm:$0xff] %v846_v50  ;;  %v797_v49 = vsub.f32 %v749_v59, %v773_v45  ;;  %v750_v43 = vmul.f32 2.0, %v643_v52  ;;  %v776_v50 = vunpack.c.l.bf16 %v1348_v8 }
 0x151   :  { %v823_v42 = vmul.f32 %v1546_v54, %v797_v49  ;;  %v798_v18 = vsub.f32 %v750_v43, %v774_v46 }
 0x152   :  { %v720_v36 = vpop.f32.mrf.mxu3 }
 0x153   :  { %v847_v55 = vadd.f32 %v823_v42, %v557_v23  ;;  %v824_v39 = vmul.f32 %v1546_v54, %v798_v18  ;;  %v721_v16 = vadd.f32 %v720_v36, %v681_v24  ;;  %v684_v32 = vpop.f32.mrf.mxu2  ;;  %v122_v24 = vmul.f32 %v1537_v61, %v1334_v0 }
 0x154   :  { %v645_v52 = vpop.f32.mrf.mxu1  ;;  %v777_v18 = vunpack.c.h.bf16 %v1348_v8  ;;  %v123_v0 = vmul.f32 %v1537_v61, %v1337_v1  ;;  %v538_v8 = vmul.f32 %v1539_v63, %v1479_v48  ;;  %v539_v48 = vmul.f32 %v1539_v63, %v1485_v7 }
 0x155   :  { %871 = vst [vmem:[#allocation9 + $0x8] sm:$0xff] %v847_v55  ;;  %v848_v35 = vadd.f32 %v824_v39, %v558_v60  ;;  %v751_v45 = vmul.f32 2.0, %v721_v16  ;;  %v646_v22 = vadd.f32 %v645_v52, %v606_v51  ;;  %v608_v59 = vpop.f32.mrf.mxu0  ;;  %v560_v49 = vadd.f32 %v536_v31, %v122_v24 }
 0x156   :  { %v561_v52 = vadd.f32 %v537_v47, %v123_v0  ;;  %v779_v31 = vunpack.c.h.bf16 %v1352_v12 }
 0x157   :  { %872 = vst [vmem:[#allocation9 + $0x10] sm:$0xff] %v848_v35  ;;  %v799_v46 = vsub.f32 %v751_v45, %v775_v20  ;;  %v752_v27 = vmul.f32 2.0, %v646_v22  ;;  %v778_v20 = vunpack.c.l.bf16 %v1352_v12  ;;  %v540_v12 = vmul.f32 %v1539_v63, %v1489_v57 }
 0x158   :  { %v541_v57 = vmul.f32 %v1539_v63, %v1495_v40 }
 0x159   :  { %v825_v19 = vmul.f32 %v1546_v54, %v799_v46  ;;  %v800_v28 = vsub.f32 %v752_v27, %v776_v50 }
 0x15a   :  { %v723_v43 = vpop.f32.mrf.mxu3 }
 0x15b   :  { %v849_v23 = vadd.f32 %v825_v19, %v559_v17  ;;  %v826_v51 = vmul.f32 %v1546_v54, %v800_v28  ;;  %v724_v42 = vadd.f32 %v723_v43, %v684_v32  ;;  %v686_v60 = vpop.f32.mrf.mxu2  ;;  %v124_v32 = vmul.f32 %v1537_v61, %v1339_v2 }
 0x15c   :  { %v647_v36 = vpop.f32.mrf.mxu1  ;;  %v125_v2 = vmul.f32 %v1537_v61, %v1341_v4 }
 0x15d   :  { %873 = vst [vmem:[#allocation9 + $0x18] sm:$0xff] %v849_v23  ;;  %v850_v55 = vadd.f32 %v826_v51, %v560_v49  ;;  %v753_v39 = vmul.f32 2.0, %v724_v42  ;;  %v648_v16 = vadd.f32 %v647_v36, %v608_v59  ;;  %v611_v26 = vpop.f32.mrf.mxu0  ;;  %v562_v45 = vadd.f32 %v538_v8, %v124_v32 }
 0x15e   :  { %v780_v49 = vunpack.c.l.bf16 %v1384_v38  ;;  %v126_v23 = vmul.f32 %v1537_v61, %v1370_v25  ;;  %v563_v42 = vadd.f32 %v539_v48, %v125_v2  ;;  %v127_v25 = vmul.f32 %v1537_v61, %v1373_v29 }
 0x15f   :  { %874 = vst [vmem:[#allocation9 + $0x20] sm:$0xff] %v850_v55  ;;  %v801_v56 = vsub.f32 %v753_v39, %v777_v18  ;;  %v754_v1 = vmul.f32 2.0, %v648_v16  ;;  %v781_v39 = vunpack.c.h.bf16 %v1384_v38  ;;  %v542_v38 = vmul.f32 %v1539_v63, %v1491_v58 }
 0x160   :  { %v543_v58 = vmul.f32 %v1539_v63, %v1497_v41 }
 0x161   :  { %v827_v3 = vmul.f32 %v1546_v54, %v801_v56  ;;  %v802_v35 = vsub.f32 %v754_v1, %v778_v20  ;;  %v782_v56 = vunpack.c.l.bf16 %v1388_v44 }
 0x162   :  { %v725_v22 = vpop.f32.mrf.mxu3 }
 0x163   :  { %v851_v50 = vadd.f32 %v827_v3, %v561_v52  ;;  %v828_v59 = vmul.f32 %v1546_v54, %v802_v35  ;;  %v726_v24 = vadd.f32 %v725_v22, %v686_v60  ;;  %v689_v46 = vpop.f32.mrf.mxu2  ;;  %v564_v60 = vadd.f32 %v540_v12, %v126_v23 }
 0x164   :  { %v650_v27 = vpop.f32.mrf.mxu1  ;;  %v128_v52 = vmul.f32 %v1537_v61, %v1375_v33  ;;  %v565_v35 = vadd.f32 %v541_v57, %v127_v25  ;;  %v129_v33 = vmul.f32 %v1537_v61, %v1377_v34  ;;  %v786_v25 = vunpack.c.l.bf16 %v1419_v13 }
 0x165   :  { %875 = vst [vmem:[#allocation9 + $0x28] sm:$0xff] %v851_v50  ;;  %v852_v17 = vadd.f32 %v828_v59, %v562_v45  ;;  %v755_v19 = vmul.f32 2.0, %v726_v24  ;;  %v651_v28 = vadd.f32 %v650_v27, %v611_v26  ;;  %v613_v43 = vpop.f32.mrf.mxu0  ;;  %v132_v57 = vmul.f32 %v1537_v61, %v1409_v9 }
 0x166   :  { %v566_v22 = vadd.f32 %v542_v38, %v128_v52  ;;  %v567_v12 = vadd.f32 %v543_v58, %v129_v33  ;;  %v133_v9 = vmul.f32 %v1537_v61, %v1411_v10 }
 0x167   :  { %876 = vst [vmem:[#allocation9 + $0x30] sm:$0xff] %v852_v17  ;;  %v803_v51 = vsub.f32 %v755_v19, %v779_v31  ;;  %v756_v4 = vmul.f32 2.0, %v651_v28  ;;  %v784_v28 = vunpack.c.l.bf16 %v1415_v11 }
 0x169   :  { %v829_v7 = vmul.f32 %v1546_v54, %v803_v51  ;;  %v804_v18 = vsub.f32 %v756_v4, %v780_v49 }
 0x16a   :  { %v728_v0 = vpop.f32.mrf.mxu3 }
 0x16b   :  { %v853_v47 = vadd.f32 %v829_v7, %v563_v42  ;;  %v830_v36 = vmul.f32 %v1546_v54, %v804_v18  ;;  %v729_v55 = vadd.f32 %v728_v0, %v689_v46  ;;  %v691_v16 = vpop.f32.mrf.mxu2  ;;  %v783_v46 = vunpack.c.h.bf16 %v1388_v44 }
 0x16c   :  { %v652_v20 = vpop.f32.mrf.mxu1  ;;  %v544_v44 = vmul.f32 %v1539_v63, %v1501_v21  ;;  %v785_v0 = vunpack.c.h.bf16 %v1415_v11  ;;  %v545_v21 = vmul.f32 %v1539_v63, %v1507_v14  ;;  %v546_v11 = vmul.f32 %v1539_v63, %v1503_v6 }
 0x16d   :  { %877 = vst [vmem:[#allocation9 + $0x38] sm:$0xff] %v853_v47  ;;  %v854_v26 = vadd.f32 %v830_v36, %v564_v60  ;;  %v757_v32 = vmul.f32 2.0, %v729_v55  ;;  %v653_v8 = vadd.f32 %v652_v20, %v613_v43  ;;  %v616_v1 = vpop.f32.mrf.mxu0  ;;  %v130_v43 = vmul.f32 %v1537_v61, %v1405_v62 }
 0x16e   :  { %v131_v62 = vmul.f32 %v1537_v61, %v1407_v5  ;;  %v547_v6 = vmul.f32 %v1539_v63, %v1509_v15 }
 0x16f   :  { %878 = vst [vmem:[#allocation9 + $0x40] sm:$0xff] %v854_v26  ;;  %v805_v3 = vsub.f32 %v757_v32, %v781_v39  ;;  %v758_v29 = vmul.f32 2.0, %v653_v8  ;;  %v568_v4 = vadd.f32 %v544_v44, %v130_v43 }
 0x170   :  { %v569_v32 = vadd.f32 %v545_v21, %v131_v62 }
 0x171   :  { %v831_v40 = vmul.f32 %v1546_v54, %v805_v3  ;;  %v806_v45 = vsub.f32 %v758_v29, %v782_v56  ;;  %v570_v56 = vadd.f32 %v546_v11, %v132_v57  ;;  %v787_v29 = vunpack.c.h.bf16 %v1419_v13 }
 0x172   :  { %v730_v50 = vpop.f32.mrf.mxu3  ;;  %v548_v13 = vmul.f32 %v1539_v63, %v1513_v53  ;;  %v1735_v53 = vld [vmem:[#allocation25_spill] sm:$0xff] }
 0x173   :  { %v855_v59 = vadd.f32 %v831_v40, %v565_v35  ;;  %v832_v24 = vmul.f32 %v1546_v54, %v806_v45  ;;  %v731_v31 = vadd.f32 %v730_v50, %v691_v16  ;;  %v694_v2 = vpop.f32.mrf.mxu2  ;;  %v549_v43 = vmul.f32 %v1539_v63, %v1735_v53 }
 0x174   :  { %v655_v48 = vpop.f32.mrf.mxu1 }
 0x175   :  { %879 = vst [vmem:[#allocation9 + $0x48] sm:$0xff] %v855_v59  ;;  %v856_v27 = vadd.f32 %v832_v24, %v566_v22  ;;  %v759_v17 = vmul.f32 2.0, %v731_v31  ;;  %v656_v19 = vadd.f32 %v655_v48, %v616_v1  ;;  %v618_v49 = vpop.f32.mrf.mxu0  ;;  %v788_v59 = vunpack.c.l.bf16 %v1435_v37 }
 0x176   :  { %v134_v24 = vmul.f32 %v1537_v61, %v1425_v30  ;;  %v1734_v30 = vld [vmem:[#allocation14_spill] sm:$0xff] }
 0x177   :  { %880 = vst [vmem:[#allocation9 + $0x50] sm:$0xff] %v856_v27  ;;  %v807_v23 = vsub.f32 %v759_v17, %v783_v46  ;;  %v760_v34 = vmul.f32 2.0, %v656_v19 }
 0x178   :  { %v572_v58 = vadd.f32 %v548_v13, %v134_v24 }
 0x179   :  { %v833_v41 = vmul.f32 %v1546_v54, %v807_v23  ;;  %v808_v51 = vsub.f32 %v760_v34, %v784_v28  ;;  %v789_v28 = vunpack.c.h.bf16 %v1435_v37 }
 0x17a   :  { %v733_v42 = vpop.f32.mrf.mxu3 }
 0x17b   :  { %v857_v7 = vadd.f32 %v833_v41, %v567_v12  ;;  %v834_v18 = vmul.f32 %v1546_v54, %v808_v51  ;;  %v734_v60 = vadd.f32 %v733_v42, %v694_v2  ;;  %v696_v47 = vpop.f32.mrf.mxu2  ;;  %v571_v2 = vadd.f32 %v547_v6, %v133_v9  ;;  %v1736_v41 = vld [vmem:[#allocation17_spill] sm:$0xff]  ;;  %v1743_v9 = vld [vmem:[#allocation27_spill] sm:$0xff] }
 0x17c   :  { %v657_v36 = vpop.f32.mrf.mxu1  ;;  %v790_v51 = vunpack.c.l.bf16 %v1736_v41  ;;  %v791_v11 = vunpack.c.h.bf16 %v1736_v41  ;;  %v552_v6 = vmul.f32 %v1539_v63, %v1743_v9 }
 0x17d   :  { %881 = vst [vmem:[#allocation9 + $0x58] sm:$0xff] %v857_v7  ;;  %v858_v55 = vadd.f32 %v834_v18, %v568_v4  ;;  %v761_v39 = vmul.f32 2.0, %v734_v60  ;;  %v658_v16 = vadd.f32 %v657_v36, %v618_v49  ;;  %v621_v20 = vpop.f32.mrf.mxu0  ;;  %v135_v49 = vmul.f32 %v1537_v61, %v1734_v30  ;;  %v1737_v4 = vld [vmem:[#allocation15_spill] sm:$0xff]  ;;  %v1738_v7 = vld [vmem:[#allocation24_spill] sm:$0xff] }
 0x17e   :  { %v136_v42 = vmul.f32 %v1537_v61, %v1737_v4  ;;  %v550_v18 = vmul.f32 %v1539_v63, %v1738_v7 }
 0x17f   :  { %882 = vst [vmem:[#allocation9 + $0x60] sm:$0xff] %v858_v55  ;;  %v809_v26 = vsub.f32 %v761_v39, %v785_v0  ;;  %v762_v5 = vmul.f32 2.0, %v658_v16 }
 0x180   :  { %v574_v36 = vadd.f32 %v550_v18, %v136_v42 }
 0x181   :  { %v835_v14 = vmul.f32 %v1546_v54, %v809_v26  ;;  %v810_v8 = vsub.f32 %v762_v5, %v786_v25  ;;  %v1740_v5 = vld [vmem:[#allocation26_spill] sm:$0xff] }
 0x182   :  { %v735_v1 = vpop.f32.mrf.mxu3 }
 0x183   :  { %v859_v52 = vadd.f32 %v835_v14, %v569_v32  ;;  %v836_v38 = vmul.f32 %v1546_v54, %v810_v8  ;;  %v736_v3 = vadd.f32 %v735_v1, %v696_v47  ;;  %v699_v40 = vpop.f32.mrf.mxu2  ;;  %v573_v47 = vadd.f32 %v549_v43, %v135_v49  ;;  %v1746_v49 = vld [vmem:[#allocation23_spill] sm:$0xff]  ;;  %v1747_v43 = vld [vmem:[#allocation20_spill] sm:$0xff] }
 0x184   :  { %v660_v35 = vpop.f32.mrf.mxu1  ;;  %v551_v32 = vmul.f32 %v1539_v63, %v1740_v5  ;;  %v794_v53 = vunpack.c.l.bf16 %v1746_v49 }
 0x185   :  { %883 = vst [vmem:[#allocation9 + $0x68] sm:$0xff] %v859_v52  ;;  %v860_v45 = vadd.f32 %v836_v38, %v570_v56  ;;  %v763_v22 = vmul.f32 2.0, %v736_v3  ;;  %v661_v50 = vadd.f32 %v660_v35, %v621_v20  ;;  %v623_v46 = vpop.f32.mrf.mxu0  ;;  %v1739_v20 = vld [vmem:[#allocation16_spill] sm:$0xff]  ;;  %v1741_v52 = vld [vmem:[#allocation22_spill] sm:$0xff] }
 0x186   :  { %v137_v26 = vmul.f32 %v1537_v61, %v1739_v20  ;;  %v792_v38 = vunpack.c.l.bf16 %v1741_v52  ;;  %v1742_v3 = vld [vmem:[#allocation18_spill] sm:$0xff] }
 0x187   :  { %884 = vst [vmem:[#allocation9 + $0x70] sm:$0xff] %v860_v45  ;;  %v811_v31 = vsub.f32 %v763_v22, %v787_v29  ;;  %v764_v10 = vmul.f32 2.0, %v661_v50  ;;  %v138_v29 = vmul.f32 %v1537_v61, %v1742_v3 }
 0x188   :  { %v575_v22 = vadd.f32 %v551_v32, %v137_v26 }
 0x189   :  { %v837_v15 = vmul.f32 %v1546_v54, %v811_v31  ;;  %v812_v33 = vsub.f32 %v764_v10, %v788_v59  ;;  %v576_v24 = vadd.f32 %v552_v6, %v138_v29 }
 0x18a   :  { %v738_v48 = vpop.f32.mrf.mxu3 }
 0x18b   :  { %v861_v27 = vadd.f32 %v837_v15, %v571_v2  ;;  %v838_v17 = vmul.f32 %v1546_v54, %v812_v33  ;;  %v739_v19 = vadd.f32 %v738_v48, %v699_v40  ;;  %v701_v37 = vpop.f32.mrf.mxu2  ;;  %v793_v2 = vunpack.c.h.bf16 %v1741_v52  ;;  %v1744_v15 = vld [vmem:[#allocation19_spill] sm:$0xff] }
 0x18c   :  { %v662_v44 = vpop.f32.mrf.mxu1  ;;  %v139_v33 = vmul.f32 %v1537_v61, %v1744_v15 }
 0x18d   :  { %885 = vst [vmem:[#allocation9 + $0x78] sm:$0xff] %v861_v27  ;;  %v862_v23 = vadd.f32 %v838_v17, %v572_v58  ;;  %v765_v34 = vmul.f32 2.0, %v739_v19  ;;  %v663_v12 = vadd.f32 %v662_v44, %v623_v46  ;;  %v626_v55 = vpop.f32.mrf.mxu0  ;;  %v1745_v58 = vld [vmem:[#allocation29_spill] sm:$0xff]  ;;  %v140_v44 = vmul.f32 %v1537_v61, %v1747_v43 }
 0x18e   :  { %v553_v48 = vmul.f32 %v1539_v63, %v1745_v58 }
 0x18f   :  { %886 = vst [vmem:[#allocation9 + $0x80] sm:$0xff] %v862_v23  ;;  %v813_v60 = vsub.f32 %v765_v34, %v789_v28  ;;  %v766_v0 = vmul.f32 2.0, %v663_v12  ;;  %v1748_v23 = vld [vmem:[#allocation28_spill] sm:$0xff] }
 0x190   :  { %v554_v34 = vmul.f32 %v1539_v63, %v1748_v23 }
 0x191   :  { %v839_v62 = vmul.f32 %v1546_v54, %v813_v60  ;;  %v814_v21 = vsub.f32 %v766_v0, %v790_v51  ;;  %v577_v51 = vadd.f32 %v553_v48, %v139_v33 }
 0x192   :  { %v740_v39 = vpop.f32.mrf.mxu3  ;;  %v578_v7 = vadd.f32 %v554_v34, %v140_v44 }
 0x193   :  { %v863_v16 = vadd.f32 %v839_v62, %v573_v47  ;;  %v840_v25 = vmul.f32 %v1546_v54, %v814_v21  ;;  %v741_v57 = vadd.f32 %v740_v39, %v701_v37  ;;  %v704_v45 = vpop.f32.mrf.mxu2  ;;  %v795_v62 = vunpack.c.h.bf16 %v1746_v49  ;;  %v1749_v21 = vld [vmem:[#allocation21_spill] sm:$0xff] }
 0x194   :  { %v665_v14 = vpop.f32.mrf.mxu1 }
 0x195   :  { %887 = vst [vmem:[#allocation9 + $0x88] sm:$0xff] %v863_v16  ;;  %v864_v8 = vadd.f32 %v840_v25, %v574_v36  ;;  %v767_v56 = vmul.f32 2.0, %v741_v57  ;;  %v666_v1 = vadd.f32 %v665_v14, %v626_v55  ;;  %v628_v27 = vpop.f32.mrf.mxu0  ;;  %v141_v36 = vmul.f32 %v1537_v61, %v1749_v21  ;;  %v1750_v55 = vld [vmem:[#allocation30_spill] sm:$0xff] }
 0x196   :  { %v555_v39 = vmul.f32 %v1539_v63, %v1750_v55 }
 0x197   :  { %888 = vst [vmem:[#allocation9 + $0x90] sm:$0xff] %v864_v8  ;;  %v815_v35 = vsub.f32 %v767_v56, %v791_v11  ;;  %v768_v40 = vmul.f32 2.0, %v666_v1 }
 0x198   :  { %v579_v11 = vadd.f32 %v555_v39, %v141_v36 }
 0x199   :  { %v841_v50 = vmul.f32 %v1546_v54, %v815_v35  ;;  %v816_v59 = vsub.f32 %v768_v40, %v792_v38 }
 0x19a   :  { %v743_v13 = vpop.f32.mrf.mxu3 }
 0x19b   :  { %v865_v31 = vadd.f32 %v841_v50, %v575_v22  ;;  %v842_v10 = vmul.f32 %v1546_v54, %v816_v59  ;;  %v744_v46 = vadd.f32 %v743_v13, %v704_v45  ;;  %v706_v18 = vpop.f32.mrf.mxu2 }
 0x19c   :  { %v667_v17 = vpop.f32.mrf.mxu1 }
 0x19d   :  { %889 = vst [vmem:[#allocation9 + $0x98] sm:$0xff] %v865_v31  ;;  %v866_v19 = vadd.f32 %v842_v10, %v576_v24  ;;  %v769_v28 = vmul.f32 2.0, %v744_v46  ;;  %v668_v30 = vadd.f32 %v667_v17, %v628_v27 }
 0x19f   :  { %890 = vst [vmem:[#allocation9 + $0xa0] sm:$0xff] %v866_v19  ;;  %v817_v12 = vsub.f32 %v769_v28, %v793_v2  ;;  %v770_v41 = vmul.f32 2.0, %v668_v30 }
 0x1a1   :  { %v843_v4 = vmul.f32 %v1546_v54, %v817_v12  ;;  %v818_v42 = vsub.f32 %v770_v41, %v794_v53 }
 0x1a2   :  { %v745_v37 = vpop.f32.mrf.mxu3 }
 0x1a3   :  { %v867_v60 = vadd.f32 %v843_v4, %v577_v51  ;;  %v844_v0 = vmul.f32 %v1546_v54, %v818_v42  ;;  %v746_v47 = vadd.f32 %v745_v37, %v706_v18 }
 0x1a5   :  { %891 = vst [vmem:[#allocation9 + $0xa8] sm:$0xff] %v867_v60  ;;  %v868_v16 = vadd.f32 %v844_v0, %v578_v7  ;;  %v771_v25 = vmul.f32 2.0, %v746_v47 }
 0x1a7   :  { %892 = vst [vmem:[#allocation9 + $0xb0] sm:$0xff] %v868_v16  ;;  %v819_v57 = vsub.f32 %v771_v25, %v795_v62 }
 0x1a9   :  { %v845_v20 = vmul.f32 %v1546_v54, %v819_v57 }
 0x1ab   :  { %v869_v26 = vadd.f32 %v845_v20, %v579_v11 }
 0x1ad   :  { %893 = vst [vmem:[#allocation9 + $0xb8] sm:$0xff] %v869_v26 }
 0x1ae   :  { %906 = dma.vmem_to_hbm [thread:$0]  %s899_s4, 3072, %s901_s7, [#allocation4], %s1182_s27, %s1182_s27, %s1183_s28  }
 0x1af   :  { %1175 = dma.done.wait [#allocation4], 3072  }
 0x1b0   :  { %1176 = vsyncadd [#allocation4], 4294964224 }
 0x1b1   :  { %911 = vsyncpa [#allocation3], 1 }
 0x1b2   :  { %912 = vsyncpa [#allocation8], 1 }
 0x1b3   :  { %913 = vsyncpa [#allocation4], 1 }
 0x1b4   :  { %914 = vsyncpa [#allocation5], 1 }

</bundles_post_ra>
